<compile_context>
chip_gen: v6e
topology: v6e:2x2x1
jax: 0.10.0
libtpu: 0.0.40
codegen_flags: <defaults>
</compile_context>

<pallas_src>
import jax
import jax.numpy as jnp
from jax.experimental import pallas as pl
from jax.experimental.pallas import tpu as pltpu


def _round_up(x, m):
    return ((x + m - 1) // m) * m


def _num_tensorcores():
    """Best-effort TensorCores-per-chip (v5e/v6e: 1, v7x: 2). Defaults to 1."""
    try:
        info = pltpu.get_tpu_info()
        for attr in ("num_cores", "tensorcores_per_chip", "num_tensorcores", "core_count"):
            v = getattr(info, attr, None)
            if v:
                return int(v)
    except Exception:
        pass
    try:
        v = getattr(jax.devices()[0], "num_cores", None)
        if v:
            return int(v)
    except Exception:
        pass
    return 1


def mlp_kernel(x_ref, w1_ref, b1_ref, w2_ref, b2_ref, w3_ref, b3_ref, o_ref):
    # Fused MLP hot path: three matmuls + ReLU/ReLU/sigmoid, all in VMEM.
    h = jnp.dot(x_ref[...], w1_ref[...], preferred_element_type=jnp.float32)
    h = jnp.maximum(h + b1_ref[...], 0.0)
    h = jnp.dot(h, w2_ref[...], preferred_element_type=jnp.float32)
    h = jnp.maximum(h + b2_ref[...], 0.0)
    h = jnp.dot(h, w3_ref[...], preferred_element_type=jnp.float32)
    # Narrow (tm, 3) store: only 12 useful bytes/row go back to HBM.
    o_ref[...] = jax.nn.sigmoid(h + b3_ref[...]).astype(o_ref.dtype)


def model_2d_forward(x, params, *, tm=1024):
    """x: [N, 26] float32.  params: dict of (w1,b1,w2,b2,w3,b3).

    Returns [N, 3] float32 (sigmoid outputs), matching the unfused f32
    reference to float tolerance.
    """
    w1, b1, w2, b2, w3, b3 = (
        params["w1"], params["b1"], params["w2"],
        params["b2"], params["w3"], params["b3"],
    )
    N, d_in = x.shape
    d_hid = w1.shape[1]
    d_out = w3.shape[1]

    # --- row tiling -------------------------------------------------------
    # Big tiles to amortize the ~0.35 us per-grid-step overhead.  Clamp to the
    # batch size (rounded to sublane granularity) so a small batch is a single
    # grid step on single-TC chips; on multi-TC chips (v7x) keep >= num_cores
    # grid steps so the "parallel" axis actually feeds every TensorCore.
    tm_eff = max(8, _round_up(min(tm, _round_up(N, 8)), 8))
    cores = _num_tensorcores()
    if cores >= 2 and N >= 2 * 8:
        per_core = max(8, _round_up(pl.cdiv(N, cores), 8))
        tm_eff = min(tm_eff, per_core)

    grid = (pl.cdiv(N, tm_eff),)  # ragged last block handled (writes masked)

    # Full-extent blocks for the (small) weights — they stay resident in VMEM;
    # only the row tile of x / out moves per grid step.
    full = lambda shape: pl.BlockSpec(shape, lambda i: tuple(0 for _ in shape))

    # --- scoped-VMEM limit only when a huge tm sweep would bust the v5e
    #     16 MiB default (double-buffered x/out tiles + hidden activations).
    weight_bytes = 4 * (d_in * d_hid + d_hid + d_hid * d_hid + d_hid + d_hid * d_out + d_out)
    vmem_est = 2 * tm_eff * 4 * (d_in + d_out + 2 * d_hid) + 2 * weight_bytes
    cp_kwargs = {"dimension_semantics": ("parallel",)}
    if vmem_est > 12 * 1024 * 1024:
        cp_kwargs["vmem_limit_bytes"] = min(2 * vmem_est, 96 * 1024 * 1024)

    out = pl.pallas_call(
        mlp_kernel,
        out_shape=jax.ShapeDtypeStruct((N, d_out), jnp.float32),
        grid_spec=pltpu.PrefetchScalarGridSpec(
            num_scalar_prefetch=0,
            grid=grid,
            in_specs=[
                pl.BlockSpec((tm_eff, d_in), lambda i: (i, 0)),  # x row tile (26 lanes)
                full((d_in, d_hid)),                             # w1
                full((1, d_hid)),                                # b1
                full((d_hid, d_hid)),                            # w2
                full((1, d_hid)),                                # b2
                full((d_hid, d_out)),                            # w3 (narrow, 3 wide)
                full((1, d_out)),                                # b3
            ],
            out_specs=pl.BlockSpec((tm_eff, d_out), lambda i: (i, 0)),
        ),
        compiler_params=pltpu.CompilerParams(**cp_kwargs),
    )(x, w1, b1, w2, b2, w3, b3)

    return out


def init_params(key, filter_size=128, num_frequencies=6):
    """Deterministic init mimicking nn.Linear's U(-1/sqrt(fan_in), 1/sqrt(fan_in))."""
    d_in = 4 * num_frequencies + 2  # 26
    d_hid = filter_size
    d_out = 3
    ks = jax.random.split(key, 6)

    def lin(kw, kb, fan_in, fan_out):
        bound = 1.0 / jnp.sqrt(fan_in)
        # stored as [fan_in, fan_out] (already transposed vs. PyTorch)
        w = jax.random.uniform(kw, (fan_in, fan_out), jnp.float32, -bound, bound)
        b = jax.random.uniform(kb, (1, fan_out), jnp.float32, -bound, bound)
        return w, b

    w1, b1 = lin(ks[0], ks[1], d_in, d_hid)
    w2, b2 = lin(ks[2], ks[3], d_hid, d_hid)
    w3, b3 = lin(ks[4], ks[5], d_hid, d_out)
    return {"w1": w1, "b1": b1, "w2": w2, "b2": b2, "w3": w3, "b3": b3}


def reference_forward(x, p):
    h = jnp.maximum(x @ p["w1"] + p["b1"], 0.0)
    h = jnp.maximum(h @ p["w2"] + p["b2"], 0.0)
    return jax.nn.sigmoid(h @ p["w3"] + p["b3"])


if __name__ == "__main__":
    key = jax.random.PRNGKey(0)
    k_param, k_x = jax.random.split(key)

    filter_size = 128
    num_frequencies = 6
    d_in = 4 * num_frequencies + 2  # 26
    N = 128                         # small batch of "2D" coordinate encodings

    params = init_params(k_param, filter_size, num_frequencies)
    x = jax.random.normal(k_x, (N, d_in), jnp.float32)

    # Small-batch path: tm clamps to the batch, 1 (or num_cores) grid step(s).
    out = jax.block_until_ready(model_2d_forward(x, params))
    ref = reference_forward(x, params)
    assert out.shape == (N, 3)
    assert jnp.allclose(out, ref, atol=1e-5, rtol=1e-5), "mismatch vs JAX reference (small batch)"

    # Larger batch, default big tile (single/few grid steps), no x padding.
    x2 = jax.random.normal(jax.random.PRNGKey(1), (1000, d_in), jnp.float32)
    out2 = jax.block_until_ready(model_2d_forward(x2, params))
    assert out2.shape == (1000, 3)
    assert jnp.allclose(out2, reference_forward(x2, params), atol=1e-5, rtol=1e-5), \
        "mismatch vs JAX reference (N=1000)"

    # Ragged last block: grid=cdiv(1000,256)=4, final block only partially valid;
    # checks that out-of-bounds tail rows never land in the visible output.
    out3 = jax.block_until_ready(model_2d_forward(x2, params, tm=256))
    assert out3.shape == (1000, 3)
    assert jnp.allclose(out3, reference_forward(x2, params), atol=1e-5, rtol=1e-5), \
        "mismatch vs JAX reference (ragged blocks)"

    print("KERNEL_OK")
</pallas_src>

<mosaic_0001>
module attributes {stable_mosaic.version = 11 : i64} {
  func.func @mlp_kernel(%arg0: i32, %arg1: memref<128x26xf32, #tpu.memory_space<vmem>>, %arg2: memref<26x128xf32, #tpu.memory_space<vmem>>, %arg3: memref<1x128xf32, #tpu.memory_space<vmem>>, %arg4: memref<128x128xf32, #tpu.memory_space<vmem>>, %arg5: memref<1x128xf32, #tpu.memory_space<vmem>>, %arg6: memref<128x3xf32, #tpu.memory_space<vmem>>, %arg7: memref<1x3xf32, #tpu.memory_space<vmem>>, %arg8: memref<128x3xf32, #tpu.memory_space<vmem>>) attributes {dimension_semantics = [#tpu.dimension_semantics<parallel>], iteration_bounds = array<i64: 1>, scalar_prefetch = 0 : i64, scratch_operands = 0 : i64, tpu.core_type = #tpu.core_type<tc>, window_params = [{transform_indices = @transform_0, window_bounds = array<i64: 128, 26>}, {pipeline_mode = #tpu.pipeline_mode<synchronous>, transform_indices = @transform_1, window_bounds = array<i64: 26, 128>}, {pipeline_mode = #tpu.pipeline_mode<synchronous>, transform_indices = @transform_2, window_bounds = array<i64: 1, 128>}, {pipeline_mode = #tpu.pipeline_mode<synchronous>, transform_indices = @transform_3, window_bounds = array<i64: 128, 128>}, {pipeline_mode = #tpu.pipeline_mode<synchronous>, transform_indices = @transform_4, window_bounds = array<i64: 1, 128>}, {pipeline_mode = #tpu.pipeline_mode<synchronous>, transform_indices = @transform_5, window_bounds = array<i64: 128, 3>}, {pipeline_mode = #tpu.pipeline_mode<synchronous>, transform_indices = @transform_6, window_bounds = array<i64: 1, 3>}, {transform_indices = @transform_7, window_bounds = array<i64: 128, 3>}]} {
    %c0 = arith.constant 0 : index
    %c0_0 = arith.constant 0 : index
    %0 = vector.load %arg1[%c0, %c0_0] : memref<128x26xf32, #tpu.memory_space<vmem>>, vector<128x26xf32>
    %c0_1 = arith.constant 0 : index
    %c0_2 = arith.constant 0 : index
    %1 = vector.load %arg2[%c0_1, %c0_2] : memref<26x128xf32, #tpu.memory_space<vmem>>, vector<26x128xf32>
    %cst = arith.constant dense<0.000000e+00> : vector<128x128xf32>
    %2 = tpu.matmul %0, %1, %cst {dimension_numbers = #tpu.dot_dimension_numbers<[1], [0], [0], [1], [0, 0, 1, 1], [], []>} : vector<128x26xf32>, vector<26x128xf32>, vector<128x128xf32> -> vector<128x128xf32>
    %c0_3 = arith.constant 0 : index
    %c0_4 = arith.constant 0 : index
    %3 = vector.load %arg3[%c0_3, %c0_4] : memref<1x128xf32, #tpu.memory_space<vmem>>, vector<1x128xf32>
    %4 = vector.broadcast %3 : vector<1x128xf32> to vector<128x128xf32>
    %5 = arith.addf %2, %4 : vector<128x128xf32>
    %cst_5 = arith.constant 0.000000e+00 : f32
    %6 = vector.broadcast %cst_5 : f32 to vector<128x128xf32>
    %7 = arith.maximumf %5, %6 : vector<128x128xf32>
    %c0_6 = arith.constant 0 : index
    %c0_7 = arith.constant 0 : index
    %8 = vector.load %arg4[%c0_6, %c0_7] : memref<128x128xf32, #tpu.memory_space<vmem>>, vector<128x128xf32>
    %cst_8 = arith.constant dense<0.000000e+00> : vector<128x128xf32>
    %9 = tpu.matmul %7, %8, %cst_8 {dimension_numbers = #tpu.dot_dimension_numbers<[1], [0], [0], [1], [0, 0, 1, 1], [], []>} : vector<128x128xf32>, vector<128x128xf32>, vector<128x128xf32> -> vector<128x128xf32>
    %c0_9 = arith.constant 0 : index
    %c0_10 = arith.constant 0 : index
    %10 = vector.load %arg5[%c0_9, %c0_10] : memref<1x128xf32, #tpu.memory_space<vmem>>, vector<1x128xf32>
    %11 = vector.broadcast %10 : vector<1x128xf32> to vector<128x128xf32>
    %12 = arith.addf %9, %11 : vector<128x128xf32>
    %cst_11 = arith.constant 0.000000e+00 : f32
    %13 = vector.broadcast %cst_11 : f32 to vector<128x128xf32>
    %14 = arith.maximumf %12, %13 : vector<128x128xf32>
    %c0_12 = arith.constant 0 : index
    %c0_13 = arith.constant 0 : index
    %15 = vector.load %arg6[%c0_12, %c0_13] : memref<128x3xf32, #tpu.memory_space<vmem>>, vector<128x3xf32>
    %cst_14 = arith.constant dense<0.000000e+00> : vector<128x3xf32>
    %16 = tpu.matmul %14, %15, %cst_14 {dimension_numbers = #tpu.dot_dimension_numbers<[1], [0], [0], [1], [0, 0, 1, 1], [], []>} : vector<128x128xf32>, vector<128x3xf32>, vector<128x3xf32> -> vector<128x3xf32>
    %c0_15 = arith.constant 0 : index
    %c0_16 = arith.constant 0 : index
    %17 = vector.load %arg7[%c0_15, %c0_16] : memref<1x3xf32, #tpu.memory_space<vmem>>, vector<1x3xf32>
    %18 = vector.broadcast %17 : vector<1x3xf32> to vector<128x3xf32>
    %19 = arith.addf %16, %18 : vector<128x3xf32>
    %20 = arith.negf %19 : vector<128x3xf32>
    %21 = math.exp %20 : vector<128x3xf32>
    %cst_17 = arith.constant 1.000000e+00 : f32
    %22 = vector.broadcast %cst_17 : f32 to vector<128x3xf32>
    %23 = arith.addf %22, %21 : vector<128x3xf32>
    %24 = arith.divf %22, %23 : vector<128x3xf32>
    %c0_18 = arith.constant 0 : index
    %c0_19 = arith.constant 0 : index
    %25 = vector.load %arg8[%c0_18, %c0_19] : memref<128x3xf32, #tpu.memory_space<vmem>>, vector<128x3xf32>
    tpu.vector_store %arg8[%c0_18, %c0_19], %24 {strides = array<i32>} : memref<128x3xf32, #tpu.memory_space<vmem>>, vector<128x3xf32>,
    return
  }
  func.func @transform_0(%arg0: i32) -> (i32, i32) {
    %c0_i32 = arith.constant 0 : i32
    %c0_i32_0 = arith.constant 0 : i32
    return %arg0, %c0_i32 : i32, i32
  }
  func.func @transform_1(%arg0: i32) -> (i32, i32) {
    %c0_i32 = arith.constant 0 : i32
    %c0_i32_0 = arith.constant 0 : i32
    %c0_i32_1 = arith.constant 0 : i32
    return %c0_i32, %c0_i32_0 : i32, i32
  }
  func.func @transform_2(%arg0: i32) -> (i32, i32) {
    %c0_i32 = arith.constant 0 : i32
    %c0_i32_0 = arith.constant 0 : i32
    %c0_i32_1 = arith.constant 0 : i32
    return %c0_i32, %c0_i32_0 : i32, i32
  }
  func.func @transform_3(%arg0: i32) -> (i32, i32) {
    %c0_i32 = arith.constant 0 : i32
    %c0_i32_0 = arith.constant 0 : i32
    %c0_i32_1 = arith.constant 0 : i32
    return %c0_i32, %c0_i32_0 : i32, i32
  }
  func.func @transform_4(%arg0: i32) -> (i32, i32) {
    %c0_i32 = arith.constant 0 : i32
    %c0_i32_0 = arith.constant 0 : i32
    %c0_i32_1 = arith.constant 0 : i32
    return %c0_i32, %c0_i32_0 : i32, i32
  }
  func.func @transform_5(%arg0: i32) -> (i32, i32) {
    %c0_i32 = arith.constant 0 : i32
    %c0_i32_0 = arith.constant 0 : i32
    %c0_i32_1 = arith.constant 0 : i32
    return %c0_i32, %c0_i32_0 : i32, i32
  }
  func.func @transform_6(%arg0: i32) -> (i32, i32) {
    %c0_i32 = arith.constant 0 : i32
    %c0_i32_0 = arith.constant 0 : i32
    %c0_i32_1 = arith.constant 0 : i32
    return %c0_i32, %c0_i32_0 : i32, i32
  }
  func.func @transform_7(%arg0: i32) -> (i32, i32) {
    %c0_i32 = arith.constant 0 : i32
    %c0_i32_0 = arith.constant 0 : i32
    return %arg0, %c0_i32 : i32, i32
  }
}

</mosaic_0001>

<bundles_post_ra>
// kernel: tpu_custom_call.1
= control target key start
LH: loop header
LB: loop body
LE: loop exit
PB: predicated region body
PF: predicated region fallthrough
CT: control target
= control target key end

     0   :  { %vm102_vm0 = vcmask 1041408   ;;  %vm53_vm1 = vcmask 211968   ;;  %vm715_vm2 = vcmask 23552   ;;  %s1471_s1 = inlined_call_operand.vmem [shape: f32[26,128], index: 1, kind: input, shape index: {}]   ;;  %s1472_s0 = inlined_call_operand.vmem [shape: f32[128,26], index: 0, kind: input, shape index: {}]   ;;  %s1473_s3 = inlined_call_operand.vmem [shape: f32[128,128], index: 3, kind: input, shape index: {}]   ;;  %s1474_s5 = inlined_call_operand.vmem [shape: f32[128,3], index: 5, kind: input, shape index: {}]   ;;  %s1475_s2 = inlined_call_operand.vmem [shape: f32[1,128], index: 2, kind: input, shape index: {}]   ;;  %s1476_s4 = inlined_call_operand.vmem [shape: f32[1,128], index: 4, kind: input, shape index: {}]   ;;  %s1477_s6 = inlined_call_operand.vmem [shape: f32[1,3], index: 6, kind: input, shape index: {}]   ;;  %s1478_s7 = inlined_call_operand.vmem [shape: f32[128,3], index: 7, kind: output, shape index: {}]  }
   0x1   :  { %v45_v0 = vld [vmem:[%s1471_s1 + $0x18] sm:$0x3]  ;;  %v44_v1 = vld [vmem:[%s1471_s1 + $0x10] sm:$0xff]  ;;  %v26_v2 = vld [vmem:[%s1472_s0] sm:$0xff] }
   0x2   :  { %856 = vmatprep.subr.msk.mxu0 %vm102_vm0, %v45_v0  ;;  %v43_v3 = vld [vmem:[%s1471_s1 + $0x8] sm:$0xff]  ;;  %864 = vmatprep.mubr.msk.f32.mxu0 %vm53_vm1, %v26_v2  ;;  %v42_v4 = vld [vmem:[%s1471_s1] sm:$0xff]  ;;  %v282_v6 = vld [vmem:[%s1473_s3 + $0x78] sm:$0xff] }
   0x3   :  { %857 = vmatpush3.msk.msra.mxu0 %vm102_vm0, %v45_v0  ;;  %v27_v5 = vld [vmem:[%s1472_s0 + $0x8] sm:$0xff]  ;;  %v28_v7 = vld [vmem:[%s1472_s0 + $0x10] sm:$0xff]  ;;  %888 = vmatprep.subr.mxu1 %v282_v6  ;;  %v29_v10 = vld [vmem:[%s1472_s0 + $0x18] sm:$0xff] }
   0x4   :  { %858 = vmatprep.subr.mxu0 %v44_v1  ;;  %v281_v8 = vld [vmem:[%s1473_s3 + $0x70] sm:$0xff]  ;;  %889 = vmatpush3.msra.mxu1 %v282_v6  ;;  %v280_v9 = vld [vmem:[%s1473_s3 + $0x68] sm:$0xff]  ;;  %v279_v11 = vld [vmem:[%s1473_s3 + $0x60] sm:$0xff] }
   0x5   :  { %859 = vmatpush3.msra.mxu0 %v44_v1  ;;  %890 = vmatprep.subr.mxu1 %v281_v8  ;;  %v30_v12 = vld [vmem:[%s1472_s0 + $0x20] sm:$0xff]  ;;  %v278_v13 = vld [vmem:[%s1473_s3 + $0x58] sm:$0xff]  ;;  %v31_v14 = vld [vmem:[%s1472_s0 + $0x28] sm:$0xff] }
   0x6   :  { %860 = vmatprep.subr.mxu0 %v43_v3  ;;  %891 = vmatpush3.msra.mxu1 %v281_v8  ;;  %v277_v15 = vld [vmem:[%s1473_s3 + $0x50] sm:$0xff]  ;;  %v276_v17 = vld [vmem:[%s1473_s3 + $0x48] sm:$0xff]  ;;  %v33_v18 = vld [vmem:[%s1472_s0 + $0x38] sm:$0xff] }
   0x7   :  { %861 = vmatpush3.msra.mxu0 %v43_v3  ;;  %892 = vmatprep.subr.mxu1 %v280_v9  ;;  %v32_v16 = vld [vmem:[%s1472_s0 + $0x30] sm:$0xff]  ;;  %v275_v19 = vld [vmem:[%s1473_s3 + $0x40] sm:$0xff]  ;;  %v274_v21 = vld [vmem:[%s1473_s3 + $0x38] sm:$0xff] }
   0x8   :  { %862 = vmatprep.subr.mxu0 %v42_v4  ;;  %893 = vmatpush3.msra.mxu1 %v280_v9  ;;  %v34_v20 = vld [vmem:[%s1472_s0 + $0x40] sm:$0xff]  ;;  %v35_v22 = vld [vmem:[%s1472_s0 + $0x48] sm:$0xff]  ;;  %v273_v23 = vld [vmem:[%s1473_s3 + $0x30] sm:$0xff] }
   0x9   :  { %863 = vmatpush3.msra.mxu0 %v42_v4  ;;  %894 = vmatprep.subr.mxu1 %v279_v11  ;;  %v36_v24 = vld [vmem:[%s1472_s0 + $0x50] sm:$0xff]  ;;  %v272_v25 = vld [vmem:[%s1473_s3 + $0x28] sm:$0xff]  ;;  %v37_v26 = vld [vmem:[%s1472_s0 + $0x58] sm:$0xff] }
   0xa   :  { %865 = vmatmul.mubr.msk.f32.vlgmr.msra.gmra.mxu0 %vm53_vm1, %v27_v5  ;;  %895 = vmatpush3.msra.mxu1 %v279_v11  ;;  %v271_v27 = vld [vmem:[%s1473_s3 + $0x20] sm:$0xff]  ;;  %v39_v29 = vld [vmem:[%s1472_s0 + $0x68] sm:$0xff]  ;;  %v40_v30 = vld [vmem:[%s1472_s0 + $0x70] sm:$0xff] }
   0xb   :  { %867 = vmatprep.mubr.msk.f32.mxu0 %vm53_vm1, %v28_v7  ;;  %896 = vmatprep.subr.mxu1 %v278_v13  ;;  %v38_v28 = vld [vmem:[%s1472_s0 + $0x60] sm:$0xff]  ;;  %v41_v31 = vld [vmem:[%s1472_s0 + $0x78] sm:$0xff]  ;;  %v269_v33 = vld [vmem:[%s1473_s3 + $0x10] sm:$0xff] }
   0xc   :  { %897 = vmatpush3.msra.mxu1 %v278_v13  ;;  %v270_v32 = vld [vmem:[%s1473_s3 + $0x18] sm:$0xff]  ;;  %v268_v34 = vld [vmem:[%s1473_s3 + $0x8] sm:$0xff]  ;;  %v267_v35 = vld [vmem:[%s1473_s3] sm:$0xff] }
   0xd   :  { %898 = vmatprep.subr.mxu1 %v277_v15  ;;  %v466_v36 = vld [vmem:[%s1474_s5 + $0x78] sm:$0xff]  ;;  %v465_v37 = vld [vmem:[%s1474_s5 + $0x70] sm:$0xff]  ;;  %v464_v38 = vld [vmem:[%s1474_s5 + $0x68] sm:$0xff] }
   0xe   :  { %868 = vmatmul.mubr.msk.f32.gmra.mxu0 %vm53_vm1, %v29_v10  ;;  %899 = vmatpush3.msra.mxu1 %v277_v15  ;;  %v1272_v39 = vld [vmem:[%s1474_s5 + $0x60] sm:$0xff]  ;;  %v1277_v40 = vld [vmem:[%s1474_s5 + $0x58] sm:$0xff]  ;;  %v1284_v41 = vld [vmem:[%s1474_s5 + $0x50] sm:$0xff] }
   0xf   :  { %870 = vmatprep.mubr.msk.f32.mxu0 %vm53_vm1, %v30_v12  ;;  %900 = vmatprep.subr.mxu1 %v276_v17  ;;  %v1291_v42 = vld [vmem:[%s1474_s5 + $0x48] sm:$0xff]  ;;  %v1298_v43 = vld [vmem:[%s1474_s5 + $0x40] sm:$0xff]  ;;  %v1305_v44 = vld [vmem:[%s1474_s5 + $0x38] sm:$0xff] }
  0x10   :  { %901 = vmatpush3.msra.mxu1 %v276_v17  ;;  %944 = vmatprep.subr.mxu0 %v466_v36  ;;  %v1312_v45 = vld [vmem:[%s1474_s5 + $0x30] sm:$0xff]  ;;  %v1319_v46 = vld [vmem:[%s1474_s5 + $0x28] sm:$0xff]  ;;  %v1326_v47 = vld [vmem:[%s1474_s5 + $0x20] sm:$0xff] }
  0x11   :  { %902 = vmatprep.subr.mxu1 %v275_v19  ;;  %945 = vmatpush3.msra.mxu0 %v466_v36  ;;  %v1335_v48 = vld [vmem:[%s1475_s2] ss:$0 sm:$0xff] }
  0x12   :  { %871 = vmatmul.mubr.msk.f32.gmra.mxu0 %vm53_vm1, %v31_v14  ;;  %903 = vmatpush3.msra.mxu1 %v275_v19 }
  0x13   :  { %873 = vmatprep.mubr.msk.f32.mxu0 %vm53_vm1, %v32_v16  ;;  %904 = vmatprep.subr.mxu1 %v274_v21 }
  0x14   :  { %905 = vmatpush3.msra.mxu1 %v274_v21  ;;  %946 = vmatprep.subr.mxu0 %v465_v37 }
  0x15   :  { %906 = vmatprep.subr.mxu1 %v273_v23  ;;  %947 = vmatpush3.msra.mxu0 %v465_v37 }
  0x16   :  { %874 = vmatmul.mubr.msk.f32.gmra.mxu0 %vm53_vm1, %v33_v18  ;;  %907 = vmatpush3.msra.mxu1 %v273_v23 }
  0x17   :  { %876 = vmatprep.mubr.msk.f32.mxu0 %vm53_vm1, %v34_v20  ;;  %908 = vmatprep.subr.mxu1 %v272_v25 }
  0x18   :  { %909 = vmatpush3.msra.mxu1 %v272_v25  ;;  %948 = vmatprep.subr.mxu0 %v464_v38 }
  0x19   :  { %910 = vmatprep.subr.mxu1 %v271_v27  ;;  %949 = vmatpush3.msra.mxu0 %v464_v38 }
  0x1a   :  { %877 = vmatmul.mubr.msk.f32.gmra.mxu0 %vm53_vm1, %v35_v22  ;;  %911 = vmatpush3.msra.mxu1 %v271_v27 }
  0x1b   :  { %879 = vmatprep.mubr.msk.f32.mxu0 %vm53_vm1, %v36_v24  ;;  %912 = vmatprep.subr.mxu1 %v270_v32 }
  0x1c   :  { %913 = vmatpush3.msra.mxu1 %v270_v32  ;;  %950 = vmatprep.subr.mxu0 %v1272_v39 }
  0x1d   :  { %914 = vmatprep.subr.mxu1 %v269_v33  ;;  %951 = vmatpush3.msra.mxu0 %v1272_v39 }
  0x1e   :  { %880 = vmatmul.mubr.msk.f32.gmra.mxu0 %vm53_vm1, %v37_v26  ;;  %915 = vmatpush3.msra.mxu1 %v269_v33  ;;  %v454_v33 = vld [vmem:[%s1474_s5 + $0x18] sm:$0xff] }
  0x1f   :  { %882 = vmatprep.mubr.msk.f32.mxu0 %vm53_vm1, %v38_v28  ;;  %916 = vmatprep.subr.mxu1 %v268_v34 }
  0x20   :  { %917 = vmatpush3.msra.mxu1 %v268_v34  ;;  %952 = vmatprep.subr.mxu0 %v1277_v40  ;;  %v453_v34 = vld [vmem:[%s1474_s5 + $0x10] sm:$0xff] }
  0x21   :  { %918 = vmatprep.subr.mxu1 %v267_v35  ;;  %953 = vmatpush3.msra.mxu0 %v1277_v40 }
  0x22   :  { %883 = vmatmul.mubr.msk.f32.gmra.mxu0 %vm53_vm1, %v39_v29  ;;  %919 = vmatpush3.msra.mxu1 %v267_v35  ;;  %v452_v35 = vld [vmem:[%s1474_s5 + $0x8] sm:$0xff] }
  0x23   :  { %885 = vmatprep.mubr.msk.f32.mxu0 %vm53_vm1, %v40_v30  ;;  %1000 = vmatprep.subr.mxu1 %v466_v36 }
  0x24   :  { %954 = vmatprep.subr.mxu0 %v1284_v41 }
  0x25   :  { %955 = vmatpush3.msra.mxu0 %v1284_v41 }
  0x26   :  { %886 = vmatmul.mubr.msk.f32.gmra.mxu0 %vm53_vm1, %v41_v31  ;;  %956 = vmatprep.subr.mxu0 %v1291_v42 }
  0x27   :  { %957 = vmatpush3.msra.mxu0 %v1291_v42 }
  0x28   :  { %958 = vmatprep.subr.mxu0 %v1298_v43 }
  0x29   :  { %959 = vmatpush3.msra.mxu0 %v1298_v43 }
  0x2a   :  { %960 = vmatprep.subr.mxu0 %v1305_v44 }
  0x2b   :  { %961 = vmatpush3.msra.mxu0 %v1305_v44 }
  0x2c   :  { %962 = vmatprep.subr.mxu0 %v1312_v45 }
  0x2d   :  { %963 = vmatpush3.msra.mxu0 %v1312_v45 }
  0x2e   :  { %964 = vmatprep.subr.mxu0 %v1319_v46 }
  0x2f   :  { %965 = vmatpush3.msra.mxu0 %v1319_v46 }
  0x30   :  { %966 = vmatprep.subr.mxu0 %v1326_v47 }
  0x31   :  { %967 = vmatpush3.msra.mxu0 %v1326_v47 }
  0x32   :  { %968 = vmatprep.subr.mxu0 %v454_v33 }
  0x33   :  { %969 = vmatpush3.msra.mxu0 %v454_v33 }
  0x34   :  { %970 = vmatprep.subr.mxu0 %v453_v34 }
  0x35   :  { %971 = vmatpush3.msra.mxu0 %v453_v34 }
  0x36   :  { %972 = vmatprep.subr.mxu0 %v452_v35 }
  0x37   :  { %973 = vmatpush3.msra.mxu0 %v452_v35 }
  0xca   :  { %v866_v49 = vpop.f32.mrf.mxu0 }
  0xcb   :  { %v178_v50 = vadd.f32 %v866_v49, %v1335_v48 }
  0xcc   :  { %v172_v51 = vpop.f32.mrf.mxu0 }
  0xcd   :  { %v173_v52 = vadd.f32 %v1335_v48, %v172_v51  ;;  %v252_v55 = vmax.f32 %v178_v50, 0.0 }
  0xce   :  { %v869_v53 = vpop.f32.mrf.mxu0 }
  0xcf   :  { %v251_v54 = vmax.f32 %v173_v52, 0.0  ;;  %v188_v56 = vadd.f32 %v869_v53, %v1335_v48 }
  0xd0   :  { %v182_v57 = vpop.f32.mrf.mxu0 }
  0xd1   :  { %v183_v58 = vadd.f32 %v1335_v48, %v182_v57  ;;  %920 = vmatprep.mubr.f32.mxu1 %v251_v54  ;;  %v254_v61 = vmax.f32 %v188_v56, 0.0 }
  0xd2   :  { %v872_v59 = vpop.f32.mrf.mxu0  ;;  %921 = vmatmul.mubr.f32.vlgmr.msra.gmra.mxu1 %v252_v55 }
  0xd3   :  { %v253_v60 = vmax.f32 %v183_v58, 0.0  ;;  %1016 = vmatpush3.msra.mxu1 %v466_v36  ;;  %v198_v62 = vadd.f32 %v872_v59, %v1335_v48  ;;  %v451_v36 = vld [vmem:[%s1474_s5] sm:$0xff] }
  0xd4   :  { %v192_v63 = vpop.f32.mrf.mxu0  ;;  %1001 = vmatprep.subr.mxu1 %v465_v37  ;;  %974 = vmatprep.subr.mxu0 %v451_v36 }
  0xd5   :  { %v193_v0 = vadd.f32 %v1335_v48, %v192_v63  ;;  %923 = vmatprep.mubr.f32.mxu1 %v253_v60  ;;  %1017 = vmatpush3.msra.mxu1 %v465_v37  ;;  %v256_v3 = vmax.f32 %v198_v62, 0.0  ;;  %v754_v37 = vld [vmem:[%s1476_s4] ss:$0 sm:$0xff] }
  0xd6   :  { %v875_v1 = vpop.f32.mrf.mxu0  ;;  %924 = vmatmul.mubr.f32.gmra.mxu1 %v254_v61  ;;  %1002 = vmatprep.subr.mxu1 %v464_v38 }
  0xd7   :  { %v255_v2 = vmax.f32 %v193_v0, 0.0  ;;  %1018 = vmatpush3.msra.mxu1 %v464_v38  ;;  %v208_v4 = vadd.f32 %v875_v1, %v1335_v48  ;;  %975 = vmatpush3.msra.mxu0 %v451_v36 }
  0xd8   :  { %v202_v5 = vpop.f32.mrf.mxu0  ;;  %1003 = vmatprep.subr.mxu1 %v1272_v39 }
  0xd9   :  { %v203_v6 = vadd.f32 %v1335_v48, %v202_v5  ;;  %926 = vmatprep.mubr.f32.mxu1 %v255_v2  ;;  %1019 = vmatpush3.msra.mxu1 %v1272_v39  ;;  %v258_v9 = vmax.f32 %v208_v4, 0.0 }
  0xda   :  { %v878_v7 = vpop.f32.mrf.mxu0  ;;  %927 = vmatmul.mubr.f32.gmra.mxu1 %v256_v3  ;;  %1004 = vmatprep.subr.mxu1 %v1277_v40 }
  0xdb   :  { %v257_v8 = vmax.f32 %v203_v6, 0.0  ;;  %1020 = vmatpush3.msra.mxu1 %v1277_v40  ;;  %v218_v10 = vadd.f32 %v878_v7, %v1335_v48 }
  0xdc   :  { %v212_v11 = vpop.f32.mrf.mxu0  ;;  %1005 = vmatprep.subr.mxu1 %v1284_v41 }
  0xdd   :  { %v213_v12 = vadd.f32 %v1335_v48, %v212_v11  ;;  %929 = vmatprep.mubr.f32.mxu1 %v257_v8  ;;  %1021 = vmatpush3.msra.mxu1 %v1284_v41  ;;  %v260_v15 = vmax.f32 %v218_v10, 0.0 }
  0xde   :  { %v881_v13 = vpop.f32.mrf.mxu0  ;;  %930 = vmatmul.mubr.f32.gmra.mxu1 %v258_v9  ;;  %1006 = vmatprep.subr.mxu1 %v1291_v42 }
  0xdf   :  { %v259_v14 = vmax.f32 %v213_v12, 0.0  ;;  %1022 = vmatpush3.msra.mxu1 %v1291_v42  ;;  %v228_v16 = vadd.f32 %v881_v13, %v1335_v48 }
  0xe0   :  { %v222_v17 = vpop.f32.mrf.mxu0  ;;  %1007 = vmatprep.subr.mxu1 %v1298_v43 }
  0xe1   :  { %v223_v18 = vadd.f32 %v1335_v48, %v222_v17  ;;  %932 = vmatprep.mubr.f32.mxu1 %v259_v14  ;;  %1023 = vmatpush3.msra.mxu1 %v1298_v43  ;;  %v262_v21 = vmax.f32 %v228_v16, 0.0 }
  0xe2   :  { %v884_v19 = vpop.f32.mrf.mxu0  ;;  %933 = vmatmul.mubr.f32.gmra.mxu1 %v260_v15  ;;  %1008 = vmatprep.subr.mxu1 %v1305_v44 }
  0xe3   :  { %v261_v20 = vmax.f32 %v223_v18, 0.0  ;;  %1024 = vmatpush3.msra.mxu1 %v1305_v44  ;;  %v238_v22 = vadd.f32 %v884_v19, %v1335_v48 }
  0xe4   :  { %v232_v23 = vpop.f32.mrf.mxu0  ;;  %1009 = vmatprep.subr.mxu1 %v1312_v45 }
  0xe5   :  { %v233_v24 = vadd.f32 %v1335_v48, %v232_v23  ;;  %935 = vmatprep.mubr.f32.mxu1 %v261_v20  ;;  %1025 = vmatpush3.msra.mxu1 %v1312_v45  ;;  %v264_v27 = vmax.f32 %v238_v22, 0.0  ;;  %v1389_v22 = vld [vmem:[%s1477_s6] ss:$0 sm:$0xff] }
  0xe6   :  { %v887_v25 = vpop.f32.mrf.mxu0  ;;  %936 = vmatmul.mubr.f32.gmra.mxu1 %v262_v21  ;;  %1010 = vmatprep.subr.mxu1 %v1319_v46 }
  0xe7   :  { %v263_v26 = vmax.f32 %v233_v24, 0.0  ;;  %1026 = vmatpush3.msra.mxu1 %v1319_v46  ;;  %v248_v28 = vadd.f32 %v887_v25, %v1335_v48 }
  0xe8   :  { %v242_v29 = vpop.f32.mrf.mxu0  ;;  %1011 = vmatprep.subr.mxu1 %v1326_v47 }
  0xe9   :  { %v243_v30 = vadd.f32 %v1335_v48, %v242_v29  ;;  %938 = vmatprep.mubr.f32.mxu1 %v263_v26  ;;  %1027 = vmatpush3.msra.mxu1 %v1326_v47  ;;  %v266_v32 = vmax.f32 %v248_v28, 0.0 }
  0xea   :  { %939 = vmatmul.mubr.f32.gmra.mxu1 %v264_v27  ;;  %1012 = vmatprep.subr.mxu1 %v454_v33 }
  0xeb   :  { %v265_v31 = vmax.f32 %v243_v30, 0.0  ;;  %1028 = vmatpush3.msra.mxu1 %v454_v33 }
  0xec   :  { %1013 = vmatprep.subr.mxu1 %v453_v34 }
  0xed   :  { %941 = vmatprep.mubr.f32.mxu1 %v265_v31  ;;  %1029 = vmatpush3.msra.mxu1 %v453_v34 }
  0xee   :  { %942 = vmatmul.mubr.f32.gmra.mxu1 %v266_v32  ;;  %1014 = vmatprep.subr.mxu1 %v452_v35 }
  0xef   :  { %1030 = vmatpush3.msra.mxu1 %v452_v35 }
  0xf0   :  { %1015 = vmatprep.subr.mxu1 %v451_v36 }
  0xf1   :  { %1031 = vmatpush3.msra.mxu1 %v451_v36 }
 0x192   :  { %v922_v38 = vpop.f32.mrf.mxu1 }
 0x193   :  { %v362_v39 = vadd.f32 %v922_v38, %v754_v37 }
 0x194   :  { %v356_v40 = vpop.f32.mrf.mxu1 }
 0x195   :  { %v357_v41 = vadd.f32 %v754_v37, %v356_v40  ;;  %v436_v44 = vmax.f32 %v362_v39, 0.0 }
 0x196   :  { %v925_v42 = vpop.f32.mrf.mxu1 }
 0x197   :  { %v435_v43 = vmax.f32 %v357_v41, 0.0  ;;  %v372_v45 = vadd.f32 %v925_v42, %v754_v37 }
 0x198   :  { %v366_v46 = vpop.f32.mrf.mxu1 }
 0x199   :  { %v367_v47 = vadd.f32 %v754_v37, %v366_v46  ;;  %976 = vmatprep.mubr.f32.mxu0 %v435_v43  ;;  %v438_v50 = vmax.f32 %v372_v45, 0.0 }
 0x19a   :  { %v928_v48 = vpop.f32.mrf.mxu1  ;;  %977 = vmatmul.mubr.f32.vlgmr.msra.gmra.mxu0 %v436_v44 }
 0x19b   :  { %v437_v49 = vmax.f32 %v367_v47, 0.0  ;;  %v382_v51 = vadd.f32 %v928_v48, %v754_v37 }
 0x19c   :  { %v376_v52 = vpop.f32.mrf.mxu1 }
 0x19d   :  { %v377_v53 = vadd.f32 %v754_v37, %v376_v52  ;;  %979 = vmatprep.mubr.f32.mxu0 %v437_v49  ;;  %v440_v56 = vmax.f32 %v382_v51, 0.0 }
 0x19e   :  { %v931_v54 = vpop.f32.mrf.mxu1  ;;  %980 = vmatmul.mubr.f32.gmra.mxu0 %v438_v50 }
 0x19f   :  { %v439_v55 = vmax.f32 %v377_v53, 0.0  ;;  %v392_v57 = vadd.f32 %v931_v54, %v754_v37 }
 0x1a0   :  { %v386_v58 = vpop.f32.mrf.mxu1 }
 0x1a1   :  { %v387_v59 = vadd.f32 %v754_v37, %v386_v58  ;;  %982 = vmatprep.mubr.f32.mxu0 %v439_v55  ;;  %v442_v62 = vmax.f32 %v392_v57, 0.0 }
 0x1a2   :  { %v934_v60 = vpop.f32.mrf.mxu1  ;;  %983 = vmatmul.mubr.f32.gmra.mxu0 %v440_v56 }
 0x1a3   :  { %v441_v61 = vmax.f32 %v387_v59, 0.0  ;;  %v402_v63 = vadd.f32 %v934_v60, %v754_v37 }
 0x1a4   :  { %v396_v0 = vpop.f32.mrf.mxu1 }
 0x1a5   :  { %v397_v1 = vadd.f32 %v754_v37, %v396_v0  ;;  %985 = vmatprep.mubr.f32.mxu0 %v441_v61  ;;  %v444_v4 = vmax.f32 %v402_v63, 0.0 }
 0x1a6   :  { %v937_v2 = vpop.f32.mrf.mxu1  ;;  %986 = vmatmul.mubr.f32.gmra.mxu0 %v442_v62 }
 0x1a7   :  { %v443_v3 = vmax.f32 %v397_v1, 0.0  ;;  %v412_v5 = vadd.f32 %v937_v2, %v754_v37 }
 0x1a8   :  { %v406_v6 = vpop.f32.mrf.mxu1 }
 0x1a9   :  { %v407_v7 = vadd.f32 %v754_v37, %v406_v6  ;;  %988 = vmatprep.mubr.f32.mxu0 %v443_v3  ;;  %v446_v10 = vmax.f32 %v412_v5, 0.0 }
 0x1aa   :  { %v940_v8 = vpop.f32.mrf.mxu1  ;;  %989 = vmatmul.mubr.f32.gmra.mxu0 %v444_v4 }
 0x1ab   :  { %v445_v9 = vmax.f32 %v407_v7, 0.0  ;;  %v422_v11 = vadd.f32 %v940_v8, %v754_v37 }
 0x1ac   :  { %v416_v12 = vpop.f32.mrf.mxu1 }
 0x1ad   :  { %v417_v13 = vadd.f32 %v754_v37, %v416_v12  ;;  %991 = vmatprep.mubr.f32.mxu0 %v445_v9  ;;  %v448_v16 = vmax.f32 %v422_v11, 0.0 }
 0x1ae   :  { %v943_v14 = vpop.f32.mrf.mxu1  ;;  %992 = vmatmul.mubr.f32.gmra.mxu0 %v446_v10 }
 0x1af   :  { %v447_v15 = vmax.f32 %v417_v13, 0.0  ;;  %v432_v17 = vadd.f32 %v943_v14, %v754_v37 }
 0x1b0   :  { %v426_v18 = vpop.f32.mrf.mxu1 }
 0x1b1   :  { %v427_v19 = vadd.f32 %v754_v37, %v426_v18  ;;  %994 = vmatprep.mubr.f32.mxu0 %v447_v15  ;;  %v450_v21 = vmax.f32 %v432_v17, 0.0 }
 0x1b2   :  { %995 = vmatmul.mubr.f32.gmra.mxu0 %v448_v16 }
 0x1b3   :  { %v449_v20 = vmax.f32 %v427_v19, 0.0 }
 0x1b5   :  { %997 = vmatprep.mubr.f32.mxu1 %v449_v20 }
 0x1b6   :  { %998 = vmatmul.mubr.f32.vlgmr.msra.gmra.mxu1 %v450_v21 }
 0x25a   :  { %v978_v23 = vpop.f32.mrf.mxu0 }
 0x25b   :  { %v546_v24 = vadd.f32 %v978_v23, %v1389_v22 }
 0x25c   :  { %v540_v25 = vpop.f32.mrf.mxu0 }
 0x25d   :  { %v757_v26 = vmul.f32 -1.442695, %v546_v24  ;;  %v541_v27 = vadd.f32 %v1389_v22, %v540_v25 }
 0x25e   :  { %v981_v28 = vpop.f32.mrf.mxu0 }
 0x25f   :  { %1032 = vpow2.f32 %v757_v26  ;;  %v756_v29 = vmul.f32 -1.442695, %v541_v27  ;;  %v556_v30 = vadd.f32 %v981_v28, %v1389_v22 }
 0x260   :  { %v550_v31 = vpop.f32.mrf.mxu0 }
 0x261   :  { %1034 = vpow2.f32 %v756_v29  ;;  %v759_v32 = vmul.f32 -1.442695, %v556_v30  ;;  %v551_v33 = vadd.f32 %v1389_v22, %v550_v31 }
 0x262   :  { %v984_v34 = vpop.f32.mrf.mxu0 }
 0x263   :  { %1036 = vpow2.f32 %v759_v32  ;;  %v758_v35 = vmul.f32 -1.442695, %v551_v33  ;;  %v566_v36 = vadd.f32 %v984_v34, %v1389_v22 }
 0x264   :  { %v560_v37 = vpop.f32.mrf.mxu0 }
 0x265   :  { %1038 = vpow2.f32 %v758_v35  ;;  %v761_v38 = vmul.f32 -1.442695, %v566_v36  ;;  %v561_v39 = vadd.f32 %v1389_v22, %v560_v37 }
 0x266   :  { %v987_v40 = vpop.f32.mrf.mxu0 }
 0x267   :  { %1040 = vpow2.f32 %v761_v38  ;;  %v760_v41 = vmul.f32 -1.442695, %v561_v39  ;;  %v576_v42 = vadd.f32 %v987_v40, %v1389_v22 }
 0x268   :  { %v570_v43 = vpop.f32.mrf.mxu0 }
 0x269   :  { %1042 = vpow2.f32 %v760_v41  ;;  %v763_v44 = vmul.f32 -1.442695, %v576_v42  ;;  %v571_v45 = vadd.f32 %v1389_v22, %v570_v43 }
 0x26a   :  { %v990_v46 = vpop.f32.mrf.mxu0 }
 0x26b   :  { %1044 = vpow2.f32 %v763_v44  ;;  %v762_v47 = vmul.f32 -1.442695, %v571_v45  ;;  %v586_v48 = vadd.f32 %v990_v46, %v1389_v22 }
 0x26c   :  { %v1033_v49 = vpop.eup %1032  ;;  %v580_v50 = vpop.f32.mrf.mxu0 }
 0x26d   :  { %v668_v51 = vadd.f32 1.0, %v1033_v49  ;;  %1046 = vpow2.f32 %v762_v47  ;;  %v765_v52 = vmul.f32 -1.442695, %v586_v48  ;;  %v581_v53 = vadd.f32 %v1389_v22, %v580_v50 }
 0x26e   :  { %v1035_v54 = vpop.eup %1034  ;;  %v993_v55 = vpop.f32.mrf.mxu0 }
 0x26f   :  { %1048 = vrcp.f32 %v668_v51  ;;  %v667_v56 = vadd.f32 1.0, %v1035_v54  ;;  %v764_v57 = vmul.f32 -1.442695, %v581_v53  ;;  %v596_v58 = vadd.f32 %v993_v55, %v1389_v22 }
 0x270   :  { %v1037_v59 = vpop.eup %1036  ;;  %1050 = vpow2.f32 %v765_v52  ;;  %v590_v60 = vpop.f32.mrf.mxu0 }
 0x271   :  { %1052 = vrcp.f32 %v667_v56  ;;  %v670_v61 = vadd.f32 1.0, %v1037_v59  ;;  %v767_v62 = vmul.f32 -1.442695, %v596_v58  ;;  %v591_v63 = vadd.f32 %v1389_v22, %v590_v60 }
 0x272   :  { %v1039_v0 = vpop.eup %1038  ;;  %1054 = vpow2.f32 %v764_v57  ;;  %v996_v1 = vpop.f32.mrf.mxu0 }
 0x273   :  { %1056 = vrcp.f32 %v670_v61  ;;  %v669_v2 = vadd.f32 1.0, %v1039_v0  ;;  %v766_v3 = vmul.f32 -1.442695, %v591_v63  ;;  %v606_v4 = vadd.f32 %v996_v1, %v1389_v22 }
 0x274   :  { %v1041_v5 = vpop.eup %1040  ;;  %1058 = vpow2.f32 %v767_v62  ;;  %v600_v6 = vpop.f32.mrf.mxu0 }
 0x275   :  { %1060 = vrcp.f32 %v669_v2  ;;  %v672_v7 = vadd.f32 1.0, %v1041_v5  ;;  %v769_v8 = vmul.f32 -1.442695, %v606_v4  ;;  %v601_v9 = vadd.f32 %v1389_v22, %v600_v6 }
 0x276   :  { %v1043_v10 = vpop.eup %1042  ;;  %1062 = vpow2.f32 %v766_v3  ;;  %v999_v11 = vpop.f32.mrf.mxu1 }
 0x277   :  { %1064 = vrcp.f32 %v672_v7  ;;  %v671_v12 = vadd.f32 1.0, %v1043_v10  ;;  %v768_v13 = vmul.f32 -1.442695, %v601_v9  ;;  %v616_v14 = vadd.f32 %v999_v11, %v1389_v22 }
 0x278   :  { %v1045_v15 = vpop.eup %1044  ;;  %1066 = vpow2.f32 %v769_v8  ;;  %v610_v16 = vpop.f32.mrf.mxu1 }
 0x279   :  { %1068 = vrcp.f32 %v671_v12  ;;  %v674_v17 = vadd.f32 1.0, %v1045_v15  ;;  %v771_v18 = vmul.f32 -1.442695, %v616_v14  ;;  %v611_v19 = vadd.f32 %v1389_v22, %v610_v16 }
 0x27a   :  { %v1047_v20 = vpop.eup %1046  ;;  %1070 = vpow2.f32 %v768_v13 }
 0x27b   :  { %1072 = vrcp.f32 %v674_v17  ;;  %v673_v21 = vadd.f32 1.0, %v1047_v20  ;;  %v770_v23 = vmul.f32 -1.442695, %v611_v19 }
 0x27c   :  { %v1049_v24 = vpop.eup %1048  ;;  %1074 = vpow2.f32 %v771_v18 }
 0x27d   :  { %v1051_v25 = vpop.eup %1050  ;;  %717 = vst.msk [vmem:[%s1478_s7 + $0x8] sm:$0xff] %vm715_vm2, %v1049_v24  ;;  %1076 = vrcp.f32 %v673_v21 }
 0x27e   :  { %v1053_v26 = vpop.eup %1052  ;;  %v676_v27 = vadd.f32 1.0, %v1051_v25  ;;  %1078 = vpow2.f32 %v770_v23 }
 0x27f   :  { %v1055_v28 = vpop.eup %1054  ;;  %716 = vst.msk [vmem:[%s1478_s7] sm:$0xff] %vm715_vm2, %v1053_v26 }
 0x280   :  { %v1057_v22 = vpop.eup %1056  ;;  %1080 = vrcp.f32 %v676_v27  ;;  %v675_v29 = vadd.f32 1.0, %v1055_v28 }
 0x281   :  { %v1059_v30 = vpop.eup %1058  ;;  %719 = vst.msk [vmem:[%s1478_s7 + $0x18] sm:$0xff] %vm715_vm2, %v1057_v22 }
 0x282   :  { %v1061_v31 = vpop.eup %1060  ;;  %1082 = vrcp.f32 %v675_v29  ;;  %v678_v32 = vadd.f32 1.0, %v1059_v30 }
 0x283   :  { %v1063_v33 = vpop.eup %1062  ;;  %718 = vst.msk [vmem:[%s1478_s7 + $0x10] sm:$0xff] %vm715_vm2, %v1061_v31 }
 0x284   :  { %v1065_v34 = vpop.eup %1064  ;;  %1084 = vrcp.f32 %v678_v32  ;;  %v677_v35 = vadd.f32 1.0, %v1063_v33 }
 0x285   :  { %v1067_v36 = vpop.eup %1066  ;;  %721 = vst.msk [vmem:[%s1478_s7 + $0x28] sm:$0xff] %vm715_vm2, %v1065_v34 }
 0x286   :  { %v1069_v37 = vpop.eup %1068  ;;  %1086 = vrcp.f32 %v677_v35  ;;  %v680_v38 = vadd.f32 1.0, %v1067_v36 }
 0x287   :  { %v1071_v39 = vpop.eup %1070  ;;  %720 = vst.msk [vmem:[%s1478_s7 + $0x20] sm:$0xff] %vm715_vm2, %v1069_v37 }
 0x288   :  { %v1073_v40 = vpop.eup %1072  ;;  %1088 = vrcp.f32 %v680_v38  ;;  %v679_v41 = vadd.f32 1.0, %v1071_v39 }
 0x289   :  { %v1075_v42 = vpop.eup %1074  ;;  %723 = vst.msk [vmem:[%s1478_s7 + $0x38] sm:$0xff] %vm715_vm2, %v1073_v40 }
 0x28a   :  { %v1077_v43 = vpop.eup %1076  ;;  %1090 = vrcp.f32 %v679_v41  ;;  %v682_v44 = vadd.f32 1.0, %v1075_v42 }
 0x28b   :  { %v1079_v45 = vpop.eup %1078  ;;  %722 = vst.msk [vmem:[%s1478_s7 + $0x30] sm:$0xff] %vm715_vm2, %v1077_v43 }
 0x28c   :  { %1092 = vrcp.f32 %v682_v44  ;;  %v681_v46 = vadd.f32 1.0, %v1079_v45 }
 0x28d   :  { %v1081_v47 = vpop.eup %1080 }
 0x28e   :  { %725 = vst.msk [vmem:[%s1478_s7 + $0x48] sm:$0xff] %vm715_vm2, %v1081_v47  ;;  %1094 = vrcp.f32 %v681_v46 }
 0x28f   :  { %v1083_v48 = vpop.eup %1082 }
 0x290   :  { %724 = vst.msk [vmem:[%s1478_s7 + $0x40] sm:$0xff] %vm715_vm2, %v1083_v48 }
 0x291   :  { %v1085_v49 = vpop.eup %1084 }
 0x292   :  { %727 = vst.msk [vmem:[%s1478_s7 + $0x58] sm:$0xff] %vm715_vm2, %v1085_v49 }
 0x293   :  { %v1087_v50 = vpop.eup %1086 }
 0x294   :  { %726 = vst.msk [vmem:[%s1478_s7 + $0x50] sm:$0xff] %vm715_vm2, %v1087_v50 }
 0x295   :  { %v1089_v51 = vpop.eup %1088 }
 0x296   :  { %729 = vst.msk [vmem:[%s1478_s7 + $0x68] sm:$0xff] %vm715_vm2, %v1089_v51 }
 0x297   :  { %v1091_v52 = vpop.eup %1090 }
 0x298   :  { %728 = vst.msk [vmem:[%s1478_s7 + $0x60] sm:$0xff] %vm715_vm2, %v1091_v52 }
 0x299   :  { %v1093_v53 = vpop.eup %1092 }
 0x29a   :  { %731 = vst.msk [vmem:[%s1478_s7 + $0x78] sm:$0xff] %vm715_vm2, %v1093_v53 }
 0x29b   :  { %v1095_v54 = vpop.eup %1094 }
 0x29c   :  { %730 = vst.msk [vmem:[%s1478_s7 + $0x70] sm:$0xff] %vm715_vm2, %v1095_v54 }

</bundles_post_ra>
